<compile_context>
chip_gen: v7x
topology: tpu7x:2x2x1
jax: 0.10.0
libtpu: 0.0.40
codegen_flags: <defaults>
</compile_context>

<pallas_src>
from functools import partial

import jax
import jax.numpy as jnp
from jax.experimental import pallas as pl
from jax.experimental.pallas import tpu as pltpu

IN_FEATURES = 3   # 2 state dims + 1 action dim (fused)
HIDDEN = 40
MAX_BT = 65536    # keeps double-buffered blocks well under v5e's 16 MiB scoped VMEM


def _round_up(n, m):
    return ((n + m - 1) // m) * m


def _make_kernel(bt, chunk):
    """Kernel for one (3, bt) activation block, processed in lane chunks."""
    n_chunks = bt // chunk
    if n_chunks <= 8:
        unroll = n_chunks
    else:
        unroll = next(u for u in (8, 4, 2, 1) if n_chunks % u == 0)

    def kernel(xt_ref, wpack_ref, out_ref):
        # Packed params (resident across grid steps):
        #   columns 0..2 = W1^T columns, 3 = b1, 4 = fc2 weight, [0,5] = fc2 bias
        wp = wpack_ref[...]          # (40, 8)
        c0 = wp[:, 0:1]              # (40, 1)
        c1 = wp[:, 1:2]
        c2 = wp[:, 2:3]
        b1 = wp[:, 3:4]
        v2 = wp[:, 4:5]
        b2 = wp[0:1, 5:6]            # (1, 1)

        def compute_chunk(off):
            x0 = xt_ref[0:1, pl.ds(off, chunk)]   # (1, chunk)
            x1 = xt_ref[1:2, pl.ds(off, chunk)]
            x2 = xt_ref[2:3, pl.ds(off, chunk)]
            # fc1 as broadcast FMAs on the VPU + relu -> (40, chunk), ~20 vregs
            h = jnp.maximum(c0 * x0 + c1 * x1 + c2 * x2 + b1, 0.0)
            # fc2: elementwise mul (VPU) + cross-sublane reduce (XLU) -> (1, chunk)
            out_ref[0:1, pl.ds(off, chunk)] = (
                jnp.sum(v2 * h, axis=0, keepdims=True) + b2)

        if n_chunks == 1:
            compute_chunk(0)
        else:
            def body(c, carry):
                compute_chunk(pl.multiple_of(c * chunk, chunk))
                return carry
            jax.lax.fori_loop(0, n_chunks, body, 0, unroll=unroll)

    return kernel


def fuse_params(params):
    """Fuse fc1_s/fc1_a, transpose for batch-on-lanes, pack into one (40, 8) array.

    Call ONCE (at init / after each weight update) and reuse the result across
    forward calls -- it is deliberately hoisted out of net_forward.
    """
    w1s, b1s, w1a, b1a, w2, b2 = params
    w1 = jnp.concatenate([w1s, w1a], axis=0)            # (3, 40); row k = W1^T col k
    b1 = (b1s + b1a).reshape(HIDDEN)                    # (40,)
    b2col = jnp.zeros((HIDDEN,), jnp.float32).at[0].set(jnp.reshape(b2, ()))
    pad = jnp.zeros((HIDDEN,), jnp.float32)
    wpack = jnp.stack(
        [w1[0], w1[1], w1[2], b1, w2.reshape(HIDDEN), b2col, pad, pad],
        axis=1)                                         # (40, 8)
    return wpack.astype(jnp.float32)


@partial(jax.jit, static_argnames=("block_b",))
def net_forward(s, a, wpack, block_b=32768):
    """s: (B, 2) f32, a: (B, 1) f32, wpack: fuse_params(params) -> (B, 1) f32."""
    B = s.shape[0]

    # --- batch tile selection (all static under jit) ---
    b_ceil = _round_up(B, 128)
    bt = max(128, (min(block_b, b_ceil, MAX_BT) // 128) * 128)
    # Keep >= 2 grid steps on multi-tile batches so the "parallel" axis can
    # shard across v7x's two TensorCores (harmless on v5e/v6e).
    if b_ceil > 128 and bt >= b_ceil:
        bt = max(128, _round_up(b_ceil // 2, 128))
    grid = (pl.cdiv(B, bt),)

    # Inner lane-chunk size: (40, chunk) f32 is ~20 vregs at chunk=512.
    chunk = 512 if bt % 512 == 0 else (256 if bt % 256 == 0 else 128)

    # Batch-on-lanes input; single fused transpose+concat pass under jit.
    xt = jnp.concatenate([s.T, a.T], axis=0)            # (3, B)

    out = pl.pallas_call(
        _make_kernel(bt, chunk),
        out_shape=jax.ShapeDtypeStruct((1, B), jnp.float32),
        grid_spec=pltpu.PrefetchScalarGridSpec(
            num_scalar_prefetch=0,
            grid=grid,
            in_specs=[
                pl.BlockSpec((IN_FEATURES, bt), lambda i: (0, i)),  # activations
                pl.BlockSpec((HIDDEN, 8), lambda i: (0, 0)),        # packed params (resident)
            ],
            out_specs=pl.BlockSpec((1, bt), lambda i: (0, i)),
        ),
        compiler_params=pltpu.CompilerParams(
            dimension_semantics=("parallel",)),
        cost_estimate=pl.CostEstimate(
            flops=B * (2 * IN_FEATURES * HIDDEN + 2 * HIDDEN + 2 * HIDDEN),
            transcendentals=0,
            bytes_accessed=4 * (IN_FEATURES * B + B + HIDDEN * 8),
        ),
    )(xt, wpack)

    return out[0, :].reshape(B, 1)


def init_params(key):
    """Deterministic init mimicking nn.Linear default (U(-1/sqrt(in), 1/sqrt(in)))."""
    k = jax.random.split(key, 6)

    def linear(kw, kb, fan_in, fan_out):
        bound = 1.0 / jnp.sqrt(jnp.float32(fan_in))
        # stored transposed: (in, out)
        w = jax.random.uniform(kw, (fan_in, fan_out), jnp.float32,
                               minval=-bound, maxval=bound)
        b = jax.random.uniform(kb, (1, fan_out), jnp.float32,
                               minval=-bound, maxval=bound)
        return w, b

    w1s, b1s = linear(k[0], k[1], 2, HIDDEN)
    w1a, b1a = linear(k[2], k[3], 1, HIDDEN)
    w2, b2 = linear(k[4], k[5], HIDDEN, 1)
    return (w1s, b1s, w1a, b1a, w2, b2)


def reference_forward(s, a, params):
    w1s, b1s, w1a, b1a, w2, b2 = params
    h = jnp.maximum(s @ w1s + b1s + a @ w1a + b1a, 0.0)
    return h @ w2 + b2


if __name__ == "__main__":
    key = jax.random.PRNGKey(0)
    kp, ks, ka = jax.random.split(key, 3)

    params = init_params(kp)
    wpack = fuse_params(params)   # hoisted: fuse/pack the weights once, reuse per call

    # Small case consistent with the module (MountainCar: state=2, action=1).
    B = 8
    s = jax.random.normal(ks, (B, 2), jnp.float32)
    a = jax.random.normal(ka, (B, 1), jnp.float32)
    out = jax.block_until_ready(net_forward(s, a, wpack))
    ref = reference_forward(s, a, params)
    assert out.shape == (B, 1)
    assert jnp.allclose(out, ref, atol=1e-5, rtol=1e-5), "mismatch vs reference (B=8)"

    # Ragged batch with >= 2 grid steps (exercises boundary clipping + megacore path).
    B2 = 300
    s2 = jax.random.normal(jax.random.PRNGKey(1), (B2, 2), jnp.float32)
    a2 = jax.random.normal(jax.random.PRNGKey(2), (B2, 1), jnp.float32)
    out2 = jax.block_until_ready(net_forward(s2, a2, wpack, block_b=512))
    ref2 = reference_forward(s2, a2, params)
    assert out2.shape == (B2, 1)
    assert jnp.allclose(out2, ref2, atol=1e-5, rtol=1e-5), "mismatch vs reference (B=300)"

    # Larger batch: exercises the multi-chunk inner fori_loop path.
    B3 = 2048
    s3 = jax.random.normal(jax.random.PRNGKey(3), (B3, 2), jnp.float32)
    a3 = jax.random.normal(jax.random.PRNGKey(4), (B3, 1), jnp.float32)
    out3 = jax.block_until_ready(net_forward(s3, a3, wpack))
    ref3 = reference_forward(s3, a3, params)
    assert out3.shape == (B3, 1)
    assert jnp.allclose(out3, ref3, atol=1e-5, rtol=1e-5), "mismatch vs reference (B=2048)"

    print("KERNEL_OK")
</pallas_src>

<mosaic_0001>
module attributes {stable_mosaic.version = 11 : i64} {
  func.func @kernel(%arg0: i32, %arg1: memref<3x128xf32, #tpu.memory_space<vmem>>, %arg2: memref<40x8xf32, #tpu.memory_space<vmem>>, %arg3: memref<1x128xf32, #tpu.memory_space<vmem>>) attributes {dimension_semantics = [#tpu.dimension_semantics<parallel>], iteration_bounds = array<i64: 1>, scalar_prefetch = 0 : i64, scratch_operands = 0 : i64, tpu.core_type = #tpu.core_type<tc>, window_params = [{transform_indices = @transform_0, window_bounds = array<i64: 3, 128>}, {pipeline_mode = #tpu.pipeline_mode<synchronous>, transform_indices = @transform_1, window_bounds = array<i64: 40, 8>}, {transform_indices = @transform_2, window_bounds = array<i64: 1, 128>}]} {
    %c0 = arith.constant 0 : index
    %c0_0 = arith.constant 0 : index
    %0 = vector.load %arg2[%c0, %c0_0] : memref<40x8xf32, #tpu.memory_space<vmem>>, vector<40x8xf32>
    %1 = vector.extract_strided_slice %0 {offsets = [0, 0], sizes = [40, 1], strides = [1, 1]} : vector<40x8xf32> to vector<40x1xf32>
    %2 = vector.extract_strided_slice %0 {offsets = [0, 1], sizes = [40, 1], strides = [1, 1]} : vector<40x8xf32> to vector<40x1xf32>
    %3 = vector.extract_strided_slice %0 {offsets = [0, 2], sizes = [40, 1], strides = [1, 1]} : vector<40x8xf32> to vector<40x1xf32>
    %4 = vector.extract_strided_slice %0 {offsets = [0, 3], sizes = [40, 1], strides = [1, 1]} : vector<40x8xf32> to vector<40x1xf32>
    %5 = vector.extract_strided_slice %0 {offsets = [0, 4], sizes = [40, 1], strides = [1, 1]} : vector<40x8xf32> to vector<40x1xf32>
    %6 = vector.extract_strided_slice %0 {offsets = [0, 5], sizes = [1, 1], strides = [1, 1]} : vector<40x8xf32> to vector<1x1xf32>
    %c0_1 = arith.constant 0 : index
    %c0_2 = arith.constant 0 : index
    %7 = vector.load %arg1[%c0_1, %c0_2] : memref<3x128xf32, #tpu.memory_space<vmem>>, vector<1x128xf32>
    %c1 = arith.constant 1 : index
    %c0_3 = arith.constant 0 : index
    %8 = vector.load %arg1[%c1, %c0_3] : memref<3x128xf32, #tpu.memory_space<vmem>>, vector<1x128xf32>
    %c2 = arith.constant 2 : index
    %c0_4 = arith.constant 0 : index
    %9 = vector.load %arg1[%c2, %c0_4] : memref<3x128xf32, #tpu.memory_space<vmem>>, vector<1x128xf32>
    %10 = vector.broadcast %1 : vector<40x1xf32> to vector<40x128xf32>
    %11 = vector.broadcast %7 : vector<1x128xf32> to vector<40x128xf32>
    %12 = arith.mulf %10, %11 : vector<40x128xf32>
    %13 = vector.broadcast %2 : vector<40x1xf32> to vector<40x128xf32>
    %14 = vector.broadcast %8 : vector<1x128xf32> to vector<40x128xf32>
    %15 = arith.mulf %13, %14 : vector<40x128xf32>
    %16 = arith.addf %12, %15 : vector<40x128xf32>
    %17 = vector.broadcast %3 : vector<40x1xf32> to vector<40x128xf32>
    %18 = vector.broadcast %9 : vector<1x128xf32> to vector<40x128xf32>
    %19 = arith.mulf %17, %18 : vector<40x128xf32>
    %20 = arith.addf %16, %19 : vector<40x128xf32>
    %21 = vector.broadcast %4 : vector<40x1xf32> to vector<40x128xf32>
    %22 = arith.addf %20, %21 : vector<40x128xf32>
    %cst = arith.constant 0.000000e+00 : f32
    %23 = vector.broadcast %cst : f32 to vector<40x128xf32>
    %24 = arith.maximumf %22, %23 : vector<40x128xf32>
    %25 = vector.broadcast %5 : vector<40x1xf32> to vector<40x128xf32>
    %26 = arith.mulf %25, %24 : vector<40x128xf32>
    %cst_5 = arith.constant dense<0.000000e+00> : vector<128xf32>
    %27 = vector.multi_reduction <add>, %26, %cst_5 [0] : vector<40x128xf32> to vector<128xf32>
    %28 = vector.shape_cast %27 : vector<128xf32> to vector<1x128xf32>
    %29 = vector.broadcast %6 : vector<1x1xf32> to vector<1x128xf32>
    %30 = arith.addf %28, %29 : vector<1x128xf32>
    %c0_6 = arith.constant 0 : index
    %c0_7 = arith.constant 0 : index
    %31 = vector.load %arg3[%c0_6, %c0_7] : memref<1x128xf32, #tpu.memory_space<vmem>>, vector<1x128xf32>
    tpu.vector_store %arg3[%c0_6, %c0_7], %30 {strides = array<i32>} : memref<1x128xf32, #tpu.memory_space<vmem>>, vector<1x128xf32>,
    return
  }
  func.func @transform_0(%arg0: i32) -> (i32, i32) {
    %c0_i32 = arith.constant 0 : i32
    %c0_i32_0 = arith.constant 0 : i32
    return %c0_i32, %arg0 : i32, i32
  }
  func.func @transform_1(%arg0: i32) -> (i32, i32) {
    %c0_i32 = arith.constant 0 : i32
    %c0_i32_0 = arith.constant 0 : i32
    %c0_i32_1 = arith.constant 0 : i32
    return %c0_i32, %c0_i32_0 : i32, i32
  }
  func.func @transform_2(%arg0: i32) -> (i32, i32) {
    %c0_i32 = arith.constant 0 : i32
    %c0_i32_0 = arith.constant 0 : i32
    return %c0_i32, %arg0 : i32, i32
  }
}

</mosaic_0001>

<bundles_post_ra>
// kernel: net_forward.1
= control target key start
LH: loop header
LB: loop body
LE: loop exit
PB: predicated region body
PF: predicated region fallthrough
CT: control target
= control target key end

     0   :  { %v260_v1 = vmov 1   ;;  %v261_v2 = vmov 0   ;;  %s318_s0 = inlined_call_operand.vmem [shape: f32[3,8], index: 0, kind: input, shape index: {}]   ;;  %s319_s1 = inlined_call_operand.vmem [shape: f32[40,8], index: 1, kind: input, shape index: {}]   ;;  %s320_s2 = inlined_call_operand.hbm [shape: f32[1,8], index: 2, kind: output, shape index: {}]  }
   0x1   :  { %v12_v0 = vld [vmem:[%s319_s1] sm:$0xff]  ;;  %218 = vset.pattern.permute.xlu1 %v260_v1  ;;  %217 = vset.pattern.permute.xlu0 %v261_v2 }
   0x2   :  { %55 = vperm.xlu1 %218, %v12_v0   ;;  %22 = vperm.xlu0 %217, %v12_v0  }
   0x3   :  { %7 = vsyncpa [#allocation3], 0  ;;  %v13_v3 = vld [vmem:[%s319_s1 + $0x8] sm:$0xff]  ;;  %v14_v4 = vld [vmem:[%s319_s1 + $0x10] sm:$0xff]  ;;  %v262_v5 = vmov 2   ;;  %v263_v8 = vmov 3  }
   0x4   :  { %v15_v6 = vld [vmem:[%s319_s1 + $0x18] sm:$0xff]  ;;  %v16_v7 = vld [vmem:[%s319_s1 + $0x20] sm:$0xff]  ;;  %v264_v9 = vmov 4   ;;  %v265_v10 = vmov 5  }
   0x5   :  { %v208_v26 = vld [vmem:[%s318_s0 + $0x1] ss:$0 sm:$0xff]  ;;  %v207_v27 = vld [vmem:[%s318_s0] ss:$0 sm:$0xff]  ;;  %v209_v28 = vld [vmem:[%s318_s0 + $0x2] ss:$0 sm:$0xff] }
   0x6   :  { %59 = vperm.xlu1 %218, %v13_v3   ;;  %27 = vperm.xlu0 %217, %v13_v3   ;;  %s266_s0 = smov [#allocation2]  }
   0x7   :  { %s199_s24 = sshll.u32 %s266_s0, 4  ;;  %s200_s24 = int_to_ptr.vmem [resolvable:$true] %s199_s24 }
   0x8   :  { %s236_s25 = scalar_lea.vmem %s200_s24, 16  ;;  %s240_s26 = scalar_lea.vmem %s200_s24, 32 }
   0x9   :  { %p237_p0 = scmp.ne.s32.totalorder %s200_s24, %s236_s25  ;;  %p241_p1 = scmp.lt.s32.totalorder %s200_s24, %s200_s24 }
   0xa   :  { %63 = vperm.xlu1 %218, %v14_v4   ;;  %32 = vperm.xlu0 %217, %v14_v4   ;;  %p242_p2 = scmp.lt.s32.totalorder %s240_s26, %s236_s25 }
   0xc   :  { %p243_p3 = por %p242_p2, %p241_p1 }
   0xe   :  { %220 = vset.pattern.permute.xlu1 %v262_v5  ;;  %219 = vset.pattern.permute.xlu0 %v262_v5  ;;  %p244_p4 = pnand %p243_p3, %p237_p0 }
   0xf   :  { %93 = vperm.xlu1 %220, %v13_v3   ;;  %89 = vperm.xlu0 %219, %v12_v0  }
  0x13   :  { %221 = vset.pattern.permute.xlu1 %v261_v2  ;;  %222 = vset.pattern.permute.xlu0 %v260_v1 }
  0x14   :  { %37 = vperm.xlu1 %221, %v15_v6   ;;  %67 = vperm.xlu0 %222, %v15_v6  }
  0x18   :  { %223 = vset.pattern.permute.xlu1 %v262_v5  ;;  %71 = vperm.xlu0 %222, %v16_v7  }
  0x19   :  { %97 = vperm.xlu1 %223, %v14_v4  }
  0x1c   :  { %226 = vset.pattern.permute.xlu0 %v263_v8 }
  0x1d   :  { %224 = vset.pattern.permute.xlu1 %v261_v2  ;;  %123 = vperm.xlu0 %226, %v12_v0  }
  0x1e   :  { %42 = vperm.xlu1 %224, %v16_v7  }
  0x21   :  { %131 = vperm.xlu0 %226, %v14_v4  }
  0x22   :  { %225 = vset.pattern.permute.xlu1 %v262_v5 }
  0x23   :  { %101 = vperm.xlu1 %225, %v15_v6  }
  0x25   :  { %230 = vset.pattern.permute.xlu0 %v264_v9 }
  0x26   :  { %153 = vperm.xlu0 %230, %v12_v0  }
  0x27   :  { %227 = vset.pattern.permute.xlu1 %v263_v8 }
  0x28   :  { %127 = vperm.xlu1 %227, %v13_v3  }
  0x2a   :  { %161 = vperm.xlu0 %230, %v14_v4  }
  0x2c   :  { %228 = vset.pattern.permute.xlu1 %v262_v5 }
  0x2d   :  { %105 = vperm.xlu1 %228, %v16_v7  }
  0x2e   :  { %169 = vperm.xlu0 %230, %v16_v7  }
  0x31   :  { %229 = vset.pattern.permute.xlu1 %v263_v8 }
  0x32   :  { %135 = vperm.xlu1 %229, %v15_v6   ;;  %235 = vset.pattern.permute.xlu0 %v265_v10 }
  0x36   :  { %231 = vset.pattern.permute.xlu1 %v264_v9 }
  0x37   :  { %157 = vperm.xlu1 %231, %v13_v3  }
  0x3b   :  { %232 = vset.pattern.permute.xlu1 %v263_v8 }
  0x3c   :  { %139 = vperm.xlu1 %232, %v16_v7  }
  0x40   :  { %233 = vset.pattern.permute.xlu1 %v264_v9 }
  0x41   :  { %165 = vperm.xlu1 %233, %v15_v6  }
  0x45   :  { %234 = vset.pattern.permute.xlu1 %v265_v10 }
  0x46   :  { %188 = vperm.xlu1 %234, %v12_v0  }
  0x81   :  { %v56_v11 = vpop.permute.xlu1 %55  ;;  %v23_v13 = vpop.permute.xlu0 %22 }
  0x82   :  { %v78_v32 = vmul.f32 %v208_v26, %v56_v11  ;;  %v49_v33 = vmul.f32 %v207_v27, %v23_v13 }
  0x84   :  { %v83_v38 = vadd.f32 %v78_v32, %v49_v33 }
  0x85   :  { %v60_v12 = vpop.permute.xlu1 %59  ;;  %v28_v15 = vpop.permute.xlu0 %27 }
  0x86   :  { %v79_v30 = vmul.f32 %v208_v26, %v60_v12  ;;  %v50_v31 = vmul.f32 %v207_v27, %v28_v15 }
  0x88   :  { %v84_v37 = vadd.f32 %v79_v30, %v50_v31 }
  0x89   :  { %v64_v14 = vpop.permute.xlu1 %63  ;;  %v33_v17 = vpop.permute.xlu0 %32 }
  0x8a   :  { %v80_v40 = vmul.f32 %v208_v26, %v64_v14  ;;  %v51_v41 = vmul.f32 %v207_v27, %v33_v17 }
  0x8c   :  { %v85_v51 = vadd.f32 %v80_v40, %v51_v41 }
  0x8e   :  { %v94_v16 = vpop.permute.xlu1 %93  ;;  %v90_v19 = vpop.permute.xlu0 %89 }
  0x8f   :  { %v113_v35 = vmul.f32 %v209_v28, %v94_v16  ;;  %v112_v36 = vmul.f32 %v209_v28, %v90_v19 }
  0x91   :  { %v118_v42 = vadd.f32 %v113_v35, %v84_v37  ;;  %v117_v44 = vadd.f32 %v112_v36, %v83_v38 }
  0x93   :  { %v38_v18 = vpop.permute.xlu1 %37  ;;  %v68_v22 = vpop.permute.xlu0 %67 }
  0x94   :  { %v52_v45 = vmul.f32 %v207_v27, %v38_v18  ;;  %v81_v46 = vmul.f32 %v208_v26, %v68_v22 }
  0x96   :  { %v86_v57 = vadd.f32 %v81_v46, %v52_v45 }
  0x97   :  { %v72_v24 = vpop.permute.xlu0 %71 }
  0x98   :  { %v98_v20 = vpop.permute.xlu1 %97  ;;  %v82_v49 = vmul.f32 %v208_v26, %v72_v24 }
  0x99   :  { %v114_v47 = vmul.f32 %v209_v28, %v98_v20 }
  0x9b   :  { %v119_v58 = vadd.f32 %v114_v47, %v85_v51 }
  0x9c   :  { %v124_v29 = vpop.permute.xlu0 %123 }
  0x9d   :  { %v43_v21 = vpop.permute.xlu1 %42  ;;  %v142_v52 = vadd.f32 %v124_v29, %v117_v44 }
  0x9e   :  { %v53_v50 = vmul.f32 %v207_v27, %v43_v21 }
  0x9f   :  { %v147_v61 = vmax.f32 %v142_v52, 0.0 }
  0xa0   :  { %v132_v39 = vpop.permute.xlu0 %131  ;;  %v87_v60 = vadd.f32 %v82_v49, %v53_v50 }
  0xa1   :  { %v144_v62 = vadd.f32 %v132_v39, %v119_v58 }
  0xa2   :  { %v102_v23 = vpop.permute.xlu1 %101 }
  0xa3   :  { %v115_v53 = vmul.f32 %v209_v28, %v102_v23  ;;  %v149_v7 = vmax.f32 %v144_v62, 0.0 }
  0xa5   :  { %v154_v54 = vpop.permute.xlu0 %153  ;;  %v120_v63 = vadd.f32 %v115_v53, %v86_v57 }
  0xa6   :  { %v172_v2 = vmul.f32 %v154_v54, %v147_v61 }
  0xa7   :  { %v128_v25 = vpop.permute.xlu1 %127 }
  0xa8   :  { %v143_v48 = vadd.f32 %v128_v25, %v118_v42 }
  0xa9   :  { %v162_v5 = vpop.permute.xlu0 %161 }
  0xaa   :  { %v148_v59 = vmax.f32 %v143_v48, 0.0  ;;  %v174_v9 = vmul.f32 %v162_v5, %v149_v7 }
  0xac   :  { %v106_v34 = vpop.permute.xlu1 %105 }
  0xad   :  { %v116_v55 = vmul.f32 %v209_v28, %v106_v34  ;;  %v170_v15 = vpop.permute.xlu0 %169 }
  0xaf   :  { %v121_v1 = vadd.f32 %v116_v55, %v87_v60 }
  0xb1   :  { %v136_v43 = vpop.permute.xlu1 %135 }
  0xb2   :  { %v145_v3 = vadd.f32 %v136_v43, %v120_v63 }
  0xb4   :  { %v150_v10 = vmax.f32 %v145_v3, 0.0 }
  0xb6   :  { %v158_v56 = vpop.permute.xlu1 %157 }
  0xb7   :  { %v173_v0 = vmul.f32 %v158_v56, %v148_v59 }
  0xb9   :  { %v177_v8 = vadd.f32 %v173_v0, %v172_v2 }
  0xbb   :  { %v140_v4 = vpop.permute.xlu1 %139  ;;  %v178_v14 = vadd.f32 %v177_v8, %v174_v9 }
  0xbc   :  { %v146_v6 = vadd.f32 %v140_v4, %v121_v1 }
  0xbe   :  { %v151_v11 = vmax.f32 %v146_v6, 0.0 }
  0xc0   :  { %v166_v12 = vpop.permute.xlu1 %165  ;;  %v176_v16 = vmul.f32 %v170_v15, %v151_v11 }
  0xc1   :  { %v175_v13 = vmul.f32 %v166_v12, %v150_v10 }
  0xc3   :  { %v179_v17 = vadd.f32 %v178_v14, %v175_v13 }
  0xc5   :  { %v180_v18 = vadd.f32 %v179_v17, %v176_v16  ;;  %v189_v24 = vpop.permute.xlu1 %188 }
  0xc7   :  { %v181_v19 = vrot.slane %v180_v18, 4 }
  0xc9   :  { %v182_v20 = vadd.f32 %v181_v19, %v180_v18 }
  0xcb   :  { %v183_v21 = vrot.slane %v182_v20, 2 }
  0xcd   :  { %v184_v22 = vadd.f32 %v183_v21, %v182_v20 }
  0xcf   :  { %v185_v23 = vrot.slane %v184_v22, 1 }
  0xd1   :  { %v186_v25 = vadd.f32 %v185_v23, %v184_v22 }
  0xd3   :  { %v191_v26 = vadd.f32 %v189_v24, %v186_v25 }
  0xd5   :  { %192 = vst [vmem:[#allocation2] sm:$0x1] %v191_v26 }
  0xd6   :  { %247 = shalt.err (!%p244_p4)
}
  0xd7   :  { %s248_s29 = scalar_lea.hbm %s320_s2, 16 }
  0xd8   :  { %p249_p5 = scmp.ne.s32.totalorder %s320_s2, %s248_s29  ;;  %p252_p6 = scmp.lt.u32.totalorder %s248_s29, %s320_s2 }
  0xda   :  { %p254_p7 = pnand %p252_p6, %p249_p5 }
  0xdc   :  { %257 = shalt.err (!%p254_p7)
}
  0xdd   :  { %202 = dma.vmem_to_hbm [thread:$0]  %s200_s24, 16, %s320_s2, [#allocation3]  }
  0xde   :  { %258 = dma.done.wait [#allocation3], 16  }
  0xdf   :  { %259 = vsyncadd [#allocation3], 4294967280 }
  0xe0   :  { %206 = vsyncpa [#allocation3], 1 }

</bundles_post_ra>
